<compile_context>
chip_gen: v7x
topology: tpu7x:2x2x1
jax: 0.10.0
libtpu: 0.0.40
codegen_flags: <defaults>
</compile_context>

<pallas_src>
import jax
import jax.numpy as jnp
from jax.experimental import pallas as pl
from jax.experimental.pallas import tpu as pltpu


def _gap_kernel(feat_ref, wg_ref, wf_ref, bf_ref, out_ref):
    # feat_ref: (Bt, N, D_in)   wg_ref: (1, D_in)
    # wf_ref:   (D_in, D_out)   bf_ref: (1, D_out)   out_ref: (Bt, D_out)
    x = feat_ref[...]  # [Bt, N, D_in], f32

    # gate_nn on the VPU/XLU: gate[b, n] = sum_d x[b, n, d] * wg[d]
    # (gate bias omitted: it cancels in the per-graph softmax).
    gate = jnp.sum(x * wg_ref[...], axis=-1, keepdims=True)  # [Bt, N, 1]

    # softmax over the node axis (softmax_nodes), normalization deferred.
    m = jnp.max(gate, axis=1, keepdims=True)   # [Bt, 1, 1]
    e = jnp.exp(gate - m)                      # [Bt, N, 1]
    s = jnp.sum(e, axis=1)                     # [Bt, 1]

    # Pool the *input* features with the unnormalized weights, then normalize
    # once: pooled[b, d] = (sum_n e[b, n] * x[b, n, d]) / s[b]
    pooled = jnp.sum(e * x, axis=1)            # [Bt, D_in]
    pooled = pooled * pl.reciprocal(s, approx=False)  # exact; trivial EUP cost

    # feat_nn applied AFTER pooling (linearity): one well-shaped MXU matmul.
    readout = (
        jnp.dot(pooled, wf_ref[...], preferred_element_type=jnp.float32)
        + bf_ref[...]
    )  # [Bt, D_out]

    out_ref[...] = readout.astype(out_ref.dtype)


def global_attention_pooling(feat, wg, bg, wf, bf, *, block_b=None):
    """feat: [B, N, D_in] -> readout [B, D_out].

    wg: [D_in, 1], bg: [1, 1] (unused: cancels in softmax), wf: [D_in, D_out],
    bf: [1, D_out].
    """
    del bg  # constant per-node gate offset cancels in softmax_nodes
    B, N, D_in = feat.shape
    D_out = wf.shape[1]

    if block_b is None:
        block_b = min(B, 8)
    assert B % block_b == 0, "B must be divisible by the graph-block size"
    grid = (B // block_b,)

    # gate weight as a broadcastable row for the VPU multiply-reduce.
    wg_row = wg.reshape(1, D_in)

    out = pl.pallas_call(
        _gap_kernel,
        out_shape=jax.ShapeDtypeStruct((B, D_out), jnp.float32),
        grid=grid,
        in_specs=[
            pl.BlockSpec((block_b, N, D_in), lambda b: (b, 0, 0)),  # node feats
            pl.BlockSpec((1, D_in), lambda b: (0, 0)),              # gate weight row
            pl.BlockSpec((D_in, D_out), lambda b: (0, 0)),          # feat weight
            pl.BlockSpec((1, D_out), lambda b: (0, 0)),             # feat bias
        ],
        out_specs=pl.BlockSpec((block_b, D_out), lambda b: (b, 0)), # 2-D, lane-dense
        compiler_params=pltpu.CompilerParams(
            dimension_semantics=("parallel",),  # shard graph blocks across TCs
        ),
    )(feat, wg_row, wf, bf)
    return out


def _reference(feat, wg, bg, wf, bf):
    gate = jnp.einsum("bnd,de->bne", feat, wg) + bg          # [B, N, 1]
    h = jnp.einsum("bnd,de->bne", feat, wf) + bf             # [B, N, D_out]
    alpha = jax.nn.softmax(gate, axis=1)                     # softmax over nodes
    return jnp.sum(h * alpha, axis=1)                        # [B, D_out]


if __name__ == "__main__":
    B, N, D_in, D_out = 16, 16, 32, 32

    key = jax.random.PRNGKey(0)
    k_feat, k_wg, k_bg, k_wf, k_bf = jax.random.split(key, 5)

    feat = jax.random.normal(k_feat, (B, N, D_in), dtype=jnp.float32)

    # Deterministic nn.Linear-style init: U(-1/sqrt(fan_in), 1/sqrt(fan_in))
    bound = 1.0 / (D_in ** 0.5)
    wg = jax.random.uniform(k_wg, (D_in, 1), jnp.float32, -bound, bound)       # gate_nn weight
    bg = jax.random.uniform(k_bg, (1, 1), jnp.float32, -bound, bound)          # gate_nn bias
    wf = jax.random.uniform(k_wf, (D_in, D_out), jnp.float32, -bound, bound)   # feat_nn weight
    bf = jax.random.uniform(k_bf, (1, D_out), jnp.float32, -bound, bound)      # feat_nn bias

    out = global_attention_pooling(feat, wg, bg, wf, bf, block_b=8)
    out = jax.block_until_ready(out)

    ref = _reference(feat, wg, bg, wf, bf)
    assert out.shape == (B, D_out)
    assert jnp.allclose(out, ref, atol=1e-5, rtol=1e-5), "mismatch vs reference"

    print("KERNEL_OK")
</pallas_src>

<mosaic_0001>
module attributes {stable_mosaic.version = 11 : i64} {
  func.func @_gap_kernel(%arg0: i32, %arg1: memref<8x16x32xf32, #tpu.memory_space<vmem>>, %arg2: memref<1x32xf32, #tpu.memory_space<vmem>>, %arg3: memref<32x32xf32, #tpu.memory_space<vmem>>, %arg4: memref<1x32xf32, #tpu.memory_space<vmem>>, %arg5: memref<8x32xf32, #tpu.memory_space<vmem>>) attributes {dimension_semantics = [#tpu.dimension_semantics<parallel>], iteration_bounds = array<i64: 2>, scalar_prefetch = 0 : i64, scratch_operands = 0 : i64, tpu.core_type = #tpu.core_type<tc>, window_params = [{transform_indices = @transform_0, window_bounds = array<i64: 8, 16, 32>}, {pipeline_mode = #tpu.pipeline_mode<synchronous>, transform_indices = @transform_1, window_bounds = array<i64: 1, 32>}, {pipeline_mode = #tpu.pipeline_mode<synchronous>, transform_indices = @transform_2, window_bounds = array<i64: 32, 32>}, {pipeline_mode = #tpu.pipeline_mode<synchronous>, transform_indices = @transform_3, window_bounds = array<i64: 1, 32>}, {transform_indices = @transform_4, window_bounds = array<i64: 8, 32>}]} {
    %c0 = arith.constant 0 : index
    %c0_0 = arith.constant 0 : index
    %c0_1 = arith.constant 0 : index
    %0 = vector.load %arg1[%c0, %c0_0, %c0_1] : memref<8x16x32xf32, #tpu.memory_space<vmem>>, vector<8x16x32xf32>
    %c0_2 = arith.constant 0 : index
    %c0_3 = arith.constant 0 : index
    %1 = vector.load %arg2[%c0_2, %c0_3] : memref<1x32xf32, #tpu.memory_space<vmem>>, vector<1x32xf32>
    %2 = vector.shape_cast %1 : vector<1x32xf32> to vector<1x1x32xf32>
    %3 = vector.broadcast %2 : vector<1x1x32xf32> to vector<8x16x32xf32>
    %4 = arith.mulf %0, %3 : vector<8x16x32xf32>
    %cst = arith.constant dense<0.000000e+00> : vector<8x16xf32>
    %5 = vector.multi_reduction <add>, %4, %cst [2] : vector<8x16x32xf32> to vector<8x16xf32>
    %6 = vector.shape_cast %5 : vector<8x16xf32> to vector<8x16x1xf32>
    %cst_4 = arith.constant dense<0xFF800000> : vector<8x1xf32>
    %7 = vector.multi_reduction <maximumf>, %6, %cst_4 [1] : vector<8x16x1xf32> to vector<8x1xf32>
    %8 = vector.shape_cast %7 : vector<8x1xf32> to vector<8x1x1xf32>
    %9 = vector.broadcast %8 : vector<8x1x1xf32> to vector<8x16x1xf32>
    %10 = arith.subf %6, %9 : vector<8x16x1xf32>
    %11 = math.exp %10 : vector<8x16x1xf32>
    %cst_5 = arith.constant dense<0.000000e+00> : vector<8x1xf32>
    %12 = vector.multi_reduction <add>, %11, %cst_5 [1] : vector<8x16x1xf32> to vector<8x1xf32>
    %13 = vector.broadcast %11 : vector<8x16x1xf32> to vector<8x16x32xf32>
    %14 = arith.mulf %13, %0 : vector<8x16x32xf32>
    %cst_6 = arith.constant dense<0.000000e+00> : vector<8x32xf32>
    %15 = vector.multi_reduction <add>, %14, %cst_6 [1] : vector<8x16x32xf32> to vector<8x32xf32>
    %16 = tpu.reciprocal %12 : vector<8x1xf32> -> vector<8x1xf32>
    %17 = vector.broadcast %16 : vector<8x1xf32> to vector<8x32xf32>
    %18 = arith.mulf %15, %17 : vector<8x32xf32>
    %c0_7 = arith.constant 0 : index
    %c0_8 = arith.constant 0 : index
    %19 = vector.load %arg3[%c0_7, %c0_8] : memref<32x32xf32, #tpu.memory_space<vmem>>, vector<32x32xf32>
    %cst_9 = arith.constant dense<0.000000e+00> : vector<8x32xf32>
    %20 = tpu.matmul %18, %19, %cst_9 {dimension_numbers = #tpu.dot_dimension_numbers<[1], [0], [0], [1], [0, 0, 1, 1], [], []>} : vector<8x32xf32>, vector<32x32xf32>, vector<8x32xf32> -> vector<8x32xf32>
    %c0_10 = arith.constant 0 : index
    %c0_11 = arith.constant 0 : index
    %21 = vector.load %arg4[%c0_10, %c0_11] : memref<1x32xf32, #tpu.memory_space<vmem>>, vector<1x32xf32>
    %22 = vector.broadcast %21 : vector<1x32xf32> to vector<8x32xf32>
    %23 = arith.addf %20, %22 : vector<8x32xf32>
    %c0_12 = arith.constant 0 : index
    %c0_13 = arith.constant 0 : index
    %24 = vector.load %arg5[%c0_12, %c0_13] : memref<8x32xf32, #tpu.memory_space<vmem>>, vector<8x32xf32>
    tpu.vector_store %arg5[%c0_12, %c0_13], %23 {strides = array<i32>} : memref<8x32xf32, #tpu.memory_space<vmem>>, vector<8x32xf32>,
    return
  }
  func.func @transform_0(%arg0: i32) -> (i32, i32, i32) {
    %c0_i32 = arith.constant 0 : i32
    %c0_i32_0 = arith.constant 0 : i32
    %c0_i32_1 = arith.constant 0 : i32
    return %arg0, %c0_i32, %c0_i32_0 : i32, i32, i32
  }
  func.func @transform_1(%arg0: i32) -> (i32, i32) {
    %c0_i32 = arith.constant 0 : i32
    %c0_i32_0 = arith.constant 0 : i32
    %c0_i32_1 = arith.constant 0 : i32
    return %c0_i32, %c0_i32_0 : i32, i32
  }
  func.func @transform_2(%arg0: i32) -> (i32, i32) {
    %c0_i32 = arith.constant 0 : i32
    %c0_i32_0 = arith.constant 0 : i32
    %c0_i32_1 = arith.constant 0 : i32
    return %c0_i32, %c0_i32_0 : i32, i32
  }
  func.func @transform_3(%arg0: i32) -> (i32, i32) {
    %c0_i32 = arith.constant 0 : i32
    %c0_i32_0 = arith.constant 0 : i32
    %c0_i32_1 = arith.constant 0 : i32
    return %c0_i32, %c0_i32_0 : i32, i32
  }
  func.func @transform_4(%arg0: i32) -> (i32, i32) {
    %c0_i32 = arith.constant 0 : i32
    %c0_i32_0 = arith.constant 0 : i32
    return %arg0, %c0_i32 : i32, i32
  }
}

</mosaic_0001>

<bundles_post_ra>
// kernel: tpu_custom_call.1
= control target key start
LH: loop header
LB: loop body
LE: loop exit
PB: predicated region body
PF: predicated region fallthrough
CT: control target
= control target key end

     0   :  { %9 = vsyncpa [#allocation3], 0  ;;  %s1475_s0 = inlined_call_operand.hbm [shape: f32[16,16,32], index: 0, kind: input, shape index: {}]   ;;  %s1476_s1 = inlined_call_operand.vmem [shape: f32[1,32], index: 1, kind: input, shape index: {}]   ;;  %s1477_s2 = inlined_call_operand.hbm [shape: f32[32,32], index: 2, kind: input, shape index: {}]   ;;  %s1478_s3 = inlined_call_operand.vmem [shape: f32[1,32], index: 3, kind: input, shape index: {}]   ;;  %s1479_s4 = inlined_call_operand.hbm [shape: f32[16,32], index: 4, kind: output, shape index: {}]  }
   0x1   :  { %11 = vsyncpa [#allocation3 + $0x1], 0 }
   0x2   :  { %12 = vsyncpa [#allocation6], 0 }
   0x3   :  { %13 = vsyncpa [#allocation4], 0 }
   0x4   :  { %15 = vsyncpa [#allocation4 + $0x1], 0  ;;  %s1101_s15 = smov 0   ;;  %s1103_s16 = smov 0  }
   0x5   :  { %s1105_s17 = smov 0   ;;  %s1107_s18 = smov 0  }
   0x6 LB: > { %s1122_s19 = sadd.s32 4294967295, %s1066_s18   ;;  %s785_s20 = sadd.s32 4294967294, %s1066_s18   ;;  %s1066_s18 = sphi %s1107_s18, %s1499_s18   ;;  %s1062_s17 = sphi %s1105_s17, %s1498_s17   ;;  %s1058_s16 = sphi %s1103_s16, %s1497_s16   ;;  %s1054_s15 = sphi %s1101_s15, %s1496_s15  }
   0x7   : > { %p41_p0 = scmp.ne.s32.totalorder %s1058_s16, %s1054_s15  ;;  %p1480_p1 = scmp.eq.s32.totalorder %s1122_s19, 0 }
   0x8   : > { %p134_p3 = scmp.eq.s32.totalorder %s785_s20, 1  ;;  %p786_p5 = scmp.ge.s32.totalorder %s1066_s18, 1 }
   0x9   : > { %p1131_p4 = por %p1480_p1, %p41_p0  ;;  %p141_p7 = scmp.lt.s32.totalorder %s1066_s18, 3 }
   0xa   : > { %p1136_p6 = por %p134_p3, %p41_p0  ;;  %s1068_s24 = smov [#allocation5]  }
   0xb   : > { %s1483_s21 = scalar_select %p1131_p4, 1, 0 }
   0xc   : > { %s1484_s22 = scalar_select %p1136_p6, 1, 0 }
   0xd   : > { %p1141_p8 = pnand %p786_p5, %p141_p7  ;;  %s156_s25 = sshll.u32 %s1068_s24, 4  ;;  %s1145_s25 = int_to_ptr.vmem [resolvable:$true] %s156_s25 }
   0xe   : > { %s1157_s27 = sadd.s32 1, %s1066_s18   ;;  %s28_s28 = sadd.s32 1, %s1062_s17 }
   0xf   : > { %s1485_s23 = scalar_select %p1141_p8, 1, 0 }
  0x10   : > { %p836_p9 = pneg %p1141_p8  ;;  %s25_s29 = ssub.s32 %s1066_s18, %s1157_s27 }
  0x11   : > { %s938_s6 = scalar_lea.hbm %s1477_s2, 512 }
  0x12   : > { %p1152_p11 = pnand %p836_p9, %p1480_p1  ;;  %p939_p12 = scmp.ne.s32.totalorder %s1477_s2, %s938_s6 }
  0x13   : > { %p945_p5 = scmp.lt.u32.totalorder %s938_s6, %s1477_s2 }
  0x14   : > { %p940_p13 = pneg %p1152_p11 }
  0x16   : > { %p941_p0 = pnand %p940_p13, %p939_p12 }
  0x18   : > { %p942_p3 = pneg %p941_p0 }
  0x1a   : > { %p947_p7 = pnand %p945_p5, %p942_p3 }
  0x1c   : > { %950 = shalt.err (!%p947_p7)
}
  0x1d   : > { %s951_s11 = scalar_lea.vmem %s1145_s25, 512  ;;  %p959_p2 = scmp.lt.s32.totalorder %s1145_s25, %s1145_s25 }
  0x1e   : > { %p952_p9 = scmp.ne.s32.totalorder %s1145_s25, %s951_s11  ;;  %p960_p6 = scmp.lt.s32.totalorder %s951_s11, %s951_s11 }
  0x20   : > { %p954_p10 = pnand %p952_p9, %p940_p13  ;;  %p961_p4 = por %p960_p6, %p959_p2 }
  0x22   : > { %p955_p1 = pneg %p954_p10 }
  0x24   : > { %p962_p8 = pnand %p961_p4, %p955_p1 }
  0x26   : > { %965 = shalt.err (!%p962_p8)
}
  0x27   : > { %s1069_s12 = smov 128   ;;  %s1070_s13 = smov 8  }
  0x28   : > { %839 = dma.hbm_to_vmem [thread:$0]  (!%p1152_p11), %s1477_s2, 512, %s1145_s25, [#allocation6], %s1069_s12, %s1069_s12, %s1070_s13  }
  0x29   : > { %p26_p1 = scmp.eq.s32.totalorder %s25_s29, 0  ;;  %p35_p2 = scmp.ne.s32.totalorder %s1062_s17, %s1058_s16 }
  0x2a   : > { %p36_p4 = scmp.eq.s32.totalorder %s1066_s18, 0  ;;  %p849_p6 = scmp.lt.s32.totalorder %s1066_s18, 2 }
  0x2b   : > { %s1191_s24 = scalar_select %p26_p1, %s1062_s17, %s28_s28  }
  0x2c   : > { %p37_p8 = por %p36_p4, %p35_p2  ;;  %p1487_p10 = scmp.eq.s32.totalorder %s1122_s19, 1 }
  0x2d   : > { %s173_s26 = sand.u32 1, %s1062_s17   ;;  %s805_s5 = sshll.u32 %s1066_s18, 11 }
  0x2e   : > { %p1195_p12 = por %p1487_p10, %p35_p2  ;;  %s789_s6 = sshll.u32 %s173_s26, 7 }
  0x2f   : > { %s1204_s9 = scalar_lea.hbm %s1475_s0, %s805_s5  ;;  %s177_s25 = scalar_lea.vmem [#allocation2], %s789_s6 }
  0x30   : > { %s185_s28 = sshll.u32 %s177_s25, 4  ;;  %p1206_p11 = pnand %p849_p6, %p37_p8  ;;  %s1210_s28 = int_to_ptr.vmem [resolvable:$true] %s185_s28 }
  0x31   : > { %s1212_s10 = scalar_lea.sflag [#allocation3], %s173_s26  ;;  %s966_s11 = scalar_lea.hbm %s1204_s9, 2048 }
  0x32   : > { %p967_p13 = scmp.ne.s32.totalorder %s1204_s9, %s966_s11  ;;  %p968_p0 = pneg %p1206_p11 }
  0x33   : > { %s971_s5 = scalar_lea.hbm %s1475_s0, 4096  ;;  %p972_p7 = scmp.lt.u32.totalorder %s1204_s9, %s1475_s0 }
  0x34   : > { %p969_p3 = pnand %p968_p0, %p967_p13  ;;  %p973_p9 = scmp.lt.u32.totalorder %s971_s5, %s966_s11 }
  0x35   : > { %p975_p2 = scmp.lt.u32.totalorder %s966_s11, %s1204_s9 }
  0x36   : > { %p970_p5 = pneg %p969_p3  ;;  %p974_p1 = por %p973_p9, %p972_p7 }
  0x38   : > { %p976_p4 = por %p975_p2, %p974_p1 }
  0x3a   : > { %p977_p6 = pnand %p976_p4, %p970_p5 }
  0x3c   : > { %980 = shalt.err (!%p977_p6)
}
  0x3d   : > { %s981_s26 = scalar_lea.vmem %s1210_s28, 2048  ;;  %s1071_s8 = smov [#allocation2]  }
  0x3e   : > { %p982_p8 = scmp.ne.s32.totalorder %s1210_s28, %s981_s26  ;;  %s986_s25 = sshll.u32 %s1071_s8, 4  ;;  %s987_s25 = int_to_ptr.vmem [resolvable:$false] %s986_s25 }
  0x3f   : > { %s988_s14 = scalar_lea.vmem %s987_s25, 4096  ;;  %p989_p3 = scmp.lt.s32.totalorder %s1210_s28, %s987_s25 }
  0x40   : > { %p984_p10 = pnand %p982_p8, %p968_p0  ;;  %p990_p7 = scmp.lt.s32.totalorder %s988_s14, %s981_s26 }
  0x42   : > { %p985_p13 = pneg %p984_p10  ;;  %p991_p9 = por %p990_p7, %p989_p3 }
  0x44   : > { %p992_p1 = pnand %p991_p9, %p985_p13 }
  0x46   : > { %995 = shalt.err (!%p992_p1)
}
  0x47   : > { %843 = dma.hbm_to_vmem [thread:$0]  (!%p1206_p11), %s1204_s9, 2048, %s1210_s28, %s1212_s10, %s1069_s12, %s1069_s12, %s1070_s13  }
  0x48   : > { %p1490_p0 = scmp.ne.s32.totalorder %s1485_s23, 0 }
  0x49   : > { %s1246_s11 = sand.u32 (!%p1490_p0), 1, %s1058_s16   ;;  %p1491_p5 = scmp.ne.s32.totalorder (!%p1490_p0), %s1483_s21, 0 }
  0x4a   : > { %197 = sbr.rel (%p1490_p0) target bundleno = 552 (0x228), region = 36  ;;  %s794_s20 = sshll.u32 (!%p1490_p0), %s1246_s11, 7 }
  0x4b   : > { %s200_s5 = scalar_lea.sflag (!%p1490_p0), [#allocation3], %s1246_s11  ;;  %s1250_s6 = scalar_lea.vmem (!%p1490_p0), [#allocation2], %s794_s20 }
  0x51   : > { %1041 = dma.done.wait (%p1491_p5), %s200_s5, 2048  }
  0x52   : > { %1043 = vsyncadd (%p1491_p5), %s200_s5, 4294965248  ;;  %p1492_p11 = scmp.eq.s32.totalorder %s1122_s19, 0 }
  0x54   : > { %1045 = dma.done.wait (%p1492_p11), [#allocation6], 512   ;;  %p1493_p2 = pmov %p1492_p11 }
  0x55   : > { %v1261_v0 = vld [vmem:[%s1250_s6 + $0x10] sm:$0xff]  ;;  %v797_v1 = vld [vmem:[%s1476_s1] ss:$0 sm:$0xff]  ;;  %vm272_vm0 = vcmask 261120   ;;  %v1272_v5 = vld [vmem:[%s1250_s6 + $0x18] sm:$0xff]  ;;  %v1072_v52 = vmov 0.0|0.0  }
  0x56   : > { %1047 = vsyncadd (%p1493_p2), [#allocation6], 4294966784  ;;  %v1267_v2 = vld [vmem:[%s1250_s6] sm:$0xff]  ;;  %v258_v3 = vmul.f32 %v797_v1, %v1261_v0  ;;  %v1275_v6 = vld [vmem:[%s1250_s6 + $0x8] sm:$0xff]  ;;  %v259_v7 = vmul.f32 %v797_v1, %v1272_v5  ;;  %822 = vmatprep.subr.bf16.mxu0 %v1072_v52  ;;  %vm1073_vm1 = vmmov 0   ;;  %v1074_v55 = vmov 0.0  }
  0x57   : > { %v256_v4 = vmul.f32 %v797_v1, %v1267_v2  ;;  %v257_v8 = vmul.f32 %v797_v1, %v1275_v6  ;;  %v1280_v9 = vld [vmem:[%s1250_s6 + $0x28] sm:$0xff]  ;;  %v1283_v10 = vld [vmem:[%s1250_s6 + $0x20] sm:$0xff]  ;;  %v1292_v17 = vld [vmem:[%s1250_s6 + $0x38] sm:$0xff]  ;;  %819 = vmatprep.mubr.msk.f32.mxu0 %vm1073_vm1, %v1074_v55  ;;  %vm604_vm2 = vcmask 1041409   ;;  %vm606_vm3 = vcmask 1042434   ;;  %s796_s21 = sshll.u32 %s1246_s11, 3 }
  0x58   : > { %v279_v11 = vsel %vm272_vm0, %v258_v3, 0.0  ;;  %v282_v13 = vsel %vm272_vm0, %v259_v7, 0.0  ;;  %v261_v15 = vmul.f32 %v797_v1, %v1280_v9  ;;  %v260_v16 = vmul.f32 %v797_v1, %v1283_v10  ;;  %v1295_v18 = vld [vmem:[%s1250_s6 + $0x30] sm:$0xff]  ;;  %v1302_v23 = vld [vmem:[%s1250_s6 + $0x48] sm:$0xff]  ;;  %v1305_v24 = vld [vmem:[%s1250_s6 + $0x40] sm:$0xff]  ;;  %s801_s28 = sshll.u32 %s1122_s19, 7 }
  0x59   : > { %v273_v12 = vsel %vm272_vm0, %v256_v4, 0.0  ;;  %280 = vadd.xlane.f32.xlu1 %v279_v11  ;;  %v276_v14 = vsel %vm272_vm0, %v257_v8, 0.0  ;;  %v263_v21 = vmul.f32 %v797_v1, %v1292_v17  ;;  %v262_v22 = vmul.f32 %v797_v1, %v1295_v18  ;;  %v1312_v29 = vld [vmem:[%s1250_s6 + $0x58] sm:$0xff]  ;;  %v1315_v30 = vld [vmem:[%s1250_s6 + $0x50] sm:$0xff]  ;;  %v1322_v35 = vld [vmem:[%s1250_s6 + $0x68] sm:$0xff]  ;;  %s231_s29 = scalar_lea.vmem [#allocation7], %s796_s21  ;;  %s1430_s8 = scalar_lea.hbm %s1479_s4, %s801_s28 }
  0x5a   : > { %274 = vadd.xlane.f32.xlu0 %v273_v12  ;;  %v288_v19 = vsel %vm272_vm0, %v261_v15, 0.0  ;;  %v285_v20 = vsel %vm272_vm0, %v260_v16, 0.0  ;;  %v265_v27 = vmul.f32 %v797_v1, %v1302_v23  ;;  %v264_v28 = vmul.f32 %v797_v1, %v1305_v24  ;;  %v1325_v36 = vld [vmem:[%s1250_s6 + $0x60] sm:$0xff]  ;;  %v1332_v41 = vld [vmem:[%s1250_s6 + $0x78] sm:$0xff]  ;;  %v1335_v42 = vld [vmem:[%s1250_s6 + $0x70] sm:$0xff]  ;;  %s705_s10 = sshll.u32 %s231_s29, 4  ;;  %s1432_s10 = int_to_ptr.vmem [resolvable:$true] %s705_s10 }
  0x5b   : > { %v294_v25 = vsel %vm272_vm0, %v263_v21, 0.0  ;;  %v291_v26 = vsel %vm272_vm0, %v262_v22, 0.0  ;;  %v267_v33 = vmul.f32 %v797_v1, %v1312_v29  ;;  %v266_v34 = vmul.f32 %v797_v1, %v1315_v30  ;;  %v585_v49 = vld [vmem:[#allocation5] sm:$0xff]  ;;  %v586_v50 = vld [vmem:[#allocation5 + $0x8] sm:$0xff]  ;;  %v587_v51 = vld [vmem:[#allocation5 + $0x10] sm:$0xff]  ;;  %s692_s25 = scalar_lea.sflag [#allocation4], %s1246_s11 }
  0x5c   : > { %v300_v31 = vsel %vm272_vm0, %v265_v27, 0.0  ;;  %v297_v32 = vsel %vm272_vm0, %v264_v28, 0.0  ;;  %v269_v39 = vmul.f32 %v797_v1, %v1322_v35  ;;  %v268_v40 = vmul.f32 %v797_v1, %v1325_v36  ;;  %v588_v54 = vld [vmem:[#allocation5 + $0x18] sm:$0xff]  ;;  %s996_s14 = scalar_lea.vmem %s1432_s10, 128  ;;  %s1075_s19 = smov [#allocation7]  }
  0x5d   : > { %283 = vadd.xlane.f32.xlu1 %v282_v13  ;;  %v306_v37 = vsel %vm272_vm0, %v267_v33, 0.0  ;;  %v303_v38 = vsel %vm272_vm0, %v266_v34, 0.0  ;;  %v271_v45 = vmul.f32 %v797_v1, %v1332_v41  ;;  %v270_v46 = vmul.f32 %v797_v1, %v1335_v42  ;;  %p997_p4 = scmp.ne.s32.totalorder %s1432_s10, %s996_s14  ;;  %s1000_s20 = sshll.u32 %s1075_s19, 4  ;;  %s1001_s20 = int_to_ptr.vmem [resolvable:$false] %s1000_s20 }
  0x5e   : > { %277 = vadd.xlane.f32.xlu0 %v276_v14  ;;  %v312_v43 = vsel %vm272_vm0, %v269_v39, 0.0  ;;  %v309_v44 = vsel %vm272_vm0, %v268_v40, 0.0  ;;  %v823_v53 = vpack.c.bf16 %v586_v50, %v585_v49  ;;  %v826_v56 = vpack.c.bf16 %v588_v54, %v587_v51  ;;  %s1002_s5 = scalar_lea.vmem %s1001_s20, 256  ;;  %p1003_p10 = scmp.lt.s32.totalorder %s1432_s10, %s1001_s20 }
  0x5f   : > { %v318_v47 = vsel %vm272_vm0, %v271_v45, 0.0  ;;  %v315_v48 = vsel %vm272_vm0, %v270_v46, 0.0  ;;  %vm608_vm4 = vcmask 1043459   ;;  %vm610_vm5 = vcmask 1044484   ;;  %p998_p6 = pnand %p997_p4, %p1195_p12  ;;  %p1004_p13 = scmp.lt.s32.totalorder %s1002_s5, %s996_s14 }
  0x60   : > { %824 = vmatpush3.bf16.msra.mxu0 %v823_v53  ;;  %vm612_vm6 = vcmask 1045509   ;;  %vm614_vm7 = vcmask 1046534   ;;  %vm616_vm8 = vcmask 1047559  }
  0x61   : > { %289 = vadd.xlane.f32.xlu1 %v288_v19  ;;  %825 = vmatprep.subr.bf16.mxu0 %v1072_v52  ;;  %p999_p8 = pneg %p998_p6  ;;  %p1005_p3 = por %p1004_p13, %p1003_p10 }
  0x62   : > { %286 = vadd.xlane.f32.xlu0 %v285_v20 }
  0x63   : > { %p1006_p7 = pnand %p1005_p3, %p999_p8 }
  0x64   : > { %827 = vmatpush3.bf16.msra.mxu0 %v826_v56 }
  0x65   : > { %295 = vadd.xlane.f32.xlu1 %v294_v25 }
  0x66   : > { %292 = vadd.xlane.f32.xlu0 %v291_v26 }
  0x69   : > { %301 = vadd.xlane.f32.xlu1 %v300_v31 }
  0x6a   : > { %298 = vadd.xlane.f32.xlu0 %v297_v32 }
  0x6d   : > { %307 = vadd.xlane.f32.xlu1 %v306_v37 }
  0x6e   : > { %304 = vadd.xlane.f32.xlu0 %v303_v38 }
  0x71   : > { %313 = vadd.xlane.f32.xlu1 %v312_v43 }
  0x72   : > { %310 = vadd.xlane.f32.xlu0 %v309_v44 }
  0x75   : > { %319 = vadd.xlane.f32.xlu1 %v318_v47 }
  0x76   : > { %316 = vadd.xlane.f32.xlu0 %v315_v48 }
  0xe6   : > { %v281_v57 = vpop.xlane.xlu1 %280 }
  0xe7   : > { %v275_v58 = vpop.xlane.xlu0 %274 }
  0xea   : > { %v284_v59 = vpop.xlane.xlu1 %283 }
  0xeb   : > { %v278_v60 = vpop.xlane.xlu0 %277  ;;  %v328_v61 = vmax.f32 %v281_v57, %v284_v59 }
  0xec   : > { %v321_v62 = vmax.f32 %v275_v58, %v278_v60 }
  0xed   : > { %v329_v63 = vrot.slane %v328_v61, 4 }
  0xee   : > { %v322_v1 = vrot.slane %v321_v62, 4  ;;  %v1343_v3 = vpop.xlane.xlu1 %289 }
  0xef   : > { %v287_v4 = vpop.xlane.xlu0 %286  ;;  %v330_v7 = vmax.f32 %v328_v61, %v329_v63 }
  0xf0   : > { %v323_v8 = vmax.f32 %v321_v62, %v322_v1  ;;  %v335_v11 = vmax.f32 %v287_v4, %v1343_v3 }
  0xf1   : > { %v331_v12 = vrot.slane %v330_v7, 2 }
  0xf2   : > { %v336_v13 = vrot.slane %v335_v11, 4  ;;  %v1346_v14 = vpop.xlane.xlu1 %295  ;;  %v324_v19 = vrot.slane %v323_v8, 2 }
  0xf3   : > { %v293_v15 = vpop.xlane.xlu0 %292  ;;  %v332_v16 = vmax.f32 %v330_v7, %v331_v12 }
  0xf4   : > { %v342_v20 = vmax.f32 %v293_v15, %v1346_v14  ;;  %v337_v21 = vmax.f32 %v335_v11, %v336_v13  ;;  %v325_v28 = vmax.f32 %v323_v8, %v324_v19 }
  0xf5   : > { %v333_v25 = vrot.slane %v332_v16, 1 }
  0xf6   : > { %v343_v22 = vrot.slane %v342_v20, 4  ;;  %v1349_v26 = vpop.xlane.xlu1 %301  ;;  %v338_v32 = vrot.slane %v337_v21, 2  ;;  %v326_v43 = vrot.slane %v325_v28, 1 }
  0xf7   : > { %v299_v27 = vpop.xlane.xlu0 %298  ;;  %v334_v34 = vmax.f32 %v332_v16, %v333_v25 }
  0xf8   : > { %v344_v31 = vmax.f32 %v342_v20, %v343_v22  ;;  %v349_v33 = vmax.f32 %v299_v27, %v1349_v26  ;;  %v339_v45 = vmax.f32 %v337_v21, %v338_v32  ;;  %v327_v51 = vmax.f32 %v325_v28, %v326_v43 }
  0xf9   : > { %v379_v48 = vsub.f32 %v281_v57, %v334_v34  ;;  %v380_v50 = vsub.f32 %v284_v59, %v334_v34 }
  0xfa   : > { %v345_v37 = vrot.slane %v344_v31, 2  ;;  %v350_v38 = vrot.slane %v349_v33, 4  ;;  %v1352_v39 = vpop.xlane.xlu1 %307  ;;  %v340_v53 = vrot.slane %v339_v45, 1  ;;  %v377_v63 = vsub.f32 %v275_v58, %v327_v51 }
  0xfb   : > { %v1354_v40 = vpop.xlane.xlu0 %304  ;;  %v397_v56 = vmul.f32 1.442695, %v379_v48  ;;  %v399_v62 = vmul.f32 1.442695, %v380_v50  ;;  %v378_v1 = vsub.f32 %v278_v60, %v327_v51 }
  0xfc   : > { %v356_v44 = vmax.f32 %v1354_v40, %v1352_v39  ;;  %v351_v46 = vmax.f32 %v349_v33, %v350_v38  ;;  %v346_v49 = vmax.f32 %v344_v31, %v345_v37  ;;  %v341_v7 = vmax.f32 %v339_v45, %v340_v53 }
  0xfd   : > { %890 = vpow2.f32 %v397_v56  ;;  %v393_v59 = vmul.f32 1.442695, %v377_v63  ;;  %v395_v16 = vmul.f32 1.442695, %v378_v1 }
  0xfe   : > { %v357_v47 = vrot.slane %v356_v44, 4  ;;  %v352_v52 = vrot.slane %v351_v46, 2  ;;  %v347_v61 = vrot.slane %v346_v49, 1  ;;  %v1358_v13 = vpop.xlane.xlu1 %313  ;;  %892 = vpow2.f32 %v399_v62 }
  0xff   : > { %v1360_v57 = vpop.xlane.xlu0 %310  ;;  %v381_v19 = vsub.f32 %v287_v4, %v341_v7  ;;  %v382_v21 = vsub.f32 %v1343_v3, %v341_v7  ;;  %894 = vpow2.f32 %v393_v59 }
 0x100   : > { %v353_v54 = vmax.f32 %v351_v46, %v352_v52  ;;  %v358_v55 = vmax.f32 %v356_v44, %v357_v47  ;;  %v348_v12 = vmax.f32 %v346_v49, %v347_v61  ;;  %v363_v58 = vmax.f32 %v1360_v57, %v1358_v13 }
 0x101   : > { %896 = vpow2.f32 %v395_v16  ;;  %v401_v28 = vmul.f32 1.442695, %v381_v19  ;;  %v403_v32 = vmul.f32 1.442695, %v382_v21 }
 0x102   : > { %v354_v8 = vrot.slane %v353_v54, 1  ;;  %v359_v11 = vrot.slane %v358_v55, 2  ;;  %v383_v60 = vsub.f32 %v293_v15, %v348_v12  ;;  %v384_v25 = vsub.f32 %v1346_v14, %v348_v12  ;;  %v1367_v44 = vpop.xlane.xlu1 %319 }
 0x103   : > { %v364_v37 = vrot.slane %v363_v58, 4  ;;  %898 = vpow2.f32 %v401_v28  ;;  %v1369_v45 = vpop.xlane.xlu0 %316 }
 0x104   : > { %v355_v20 = vmax.f32 %v353_v54, %v354_v8  ;;  %v360_v22 = vmax.f32 %v358_v55, %v359_v11  ;;  %v405_v4 = vmul.f32 1.442695, %v383_v60  ;;  %v407_v38 = vmul.f32 1.442695, %v384_v25 }
 0x105   : > { %900 = vpow2.f32 %v403_v32  ;;  %v365_v47 = vmax.f32 %v363_v58, %v364_v37 }
 0x106   : > { %v385_v31 = vsub.f32 %v299_v27, %v355_v20  ;;  %v386_v33 = vsub.f32 %v1349_v26, %v355_v20  ;;  %v361_v34 = vrot.slane %v360_v22, 1  ;;  %902 = vpow2.f32 %v405_v4 }
 0x107   : > { %v891_v43 = vpop.eup %890  ;;  %904 = vpow2.f32 %v407_v38  ;;  %v370_v26 = vmax.f32 %v1369_v45, %v1367_v44  ;;  %v366_v52 = vrot.slane %v365_v47, 2 }
 0x108   : > { %v409_v3 = vmul.f32 1.442695, %v385_v31  ;;  %v893_v15 = vpop.eup %892  ;;  %v411_v14 = vmul.f32 1.442695, %v386_v33  ;;  %v362_v46 = vmax.f32 %v360_v22, %v361_v34  ;;  %v483_v48 = vmul.f32 %v891_v43, %v1261_v0 }
 0x109   : > { %v432_v27 = vadd.f32 %v893_v15, %v891_v43  ;;  %v484_v49 = vmul.f32 %v893_v15, %v1272_v5  ;;  %v895_v50 = vpop.eup %894  ;;  %v371_v54 = vrot.slane %v370_v26, 4  ;;  %v367_v1 = vmax.f32 %v365_v47, %v366_v52 }
 0x10a   : > { %906 = vpow2.f32 %v409_v3  ;;  %v387_v51 = vsub.f32 %v1354_v40, %v362_v46  ;;  %v506_v56 = vsel %vm272_vm0, %v483_v48, 0.0  ;;  %v388_v62 = vsub.f32 %v1352_v39, %v362_v46 }
 0x10b   : > { %908 = vpow2.f32 %v411_v14  ;;  %v897_v53 = vpop.eup %896  ;;  %v433_v55 = vrot.slane %v432_v27, 4  ;;  %v507_v61 = vsel %vm272_vm0, %v484_v49, 0.0  ;;  %v481_v5 = vmul.f32 %v895_v50, %v1267_v2 }
 0x10c   : > { %v413_v63 = vmul.f32 1.442695, %v387_v51  ;;  %v425_v7 = vadd.f32 %v897_v53, %v895_v50  ;;  %v508_v11 = vadd.f32 %v507_v61, %v506_v56  ;;  %v482_v40 = vmul.f32 %v897_v53, %v1275_v6 }
 0x10d   : > { %v899_v0 = vpop.eup %898  ;;  %v372_v12 = vmax.f32 %v370_v26, %v371_v54  ;;  %v434_v16 = vadd.f32 %v433_v55, %v432_v27  ;;  %v415_v19 = vmul.f32 1.442695, %v388_v62  ;;  %v368_v21 = vrot.slane %v367_v1, 1 }
 0x10e   : > { %910 = vpow2.f32 %v413_v63  ;;  %v426_v58 = vrot.slane %v425_v7, 4  ;;  %v497_v39 = vsel %vm272_vm0, %v481_v5, 0.0  ;;  %v485_v60 = vmul.f32 %v899_v0, %v1283_v10 }
 0x10f   : > { %v901_v8 = vpop.eup %900  ;;  %912 = vpow2.f32 %v415_v19  ;;  %v509_v2 = vrot.slane %v508_v11, 4  ;;  %v498_v28 = vsel %vm272_vm0, %v482_v40, 0.0  ;;  %v369_v31 = vmax.f32 %v367_v1, %v368_v21 }
 0x110   : > { %v903_v59 = vpop.eup %902  ;;  %v373_v6 = vrot.slane %v372_v12, 2  ;;  %v435_v32 = vrot.slane %v434_v16, 2  ;;  %v439_v33 = vadd.f32 %v901_v8, %v899_v0  ;;  %v486_v34 = vmul.f32 %v901_v8, %v1280_v9 }
 0x111   : > { %v905_v20 = vpop.eup %904  ;;  %v389_v4 = vsub.f32 %v1360_v57, %v369_v31  ;;  %v390_v38 = vsub.f32 %v1358_v13, %v369_v31  ;;  %v427_v3 = vadd.f32 %v426_v58, %v425_v7  ;;  %v499_v15 = vadd.f32 %v498_v28, %v497_v39 }
 0x112   : > { %v446_v37 = vadd.f32 %v905_v20, %v903_v59  ;;  %v374_v43 = vmax.f32 %v372_v12, %v373_v6  ;;  %v515_v10 = vsel %vm272_vm0, %v485_v60, 0.0  ;;  %v1388_v46 = vadd.f32 %v509_v2, %v508_v11 }
 0x113   : > { %v417_v47 = vmul.f32 1.442695, %v389_v4  ;;  %v419_v26 = vmul.f32 1.442695, %v390_v38  ;;  %v436_v48 = vadd.f32 %v435_v32, %v434_v16  ;;  %v440_v49 = vrot.slane %v439_v33, 4 }
 0x114   : > { %v907_v22 = vpop.eup %906  ;;  %v375_v27 = vrot.slane %v374_v43, 1  ;;  %v516_v9 = vsel %vm272_vm0, %v486_v34, 0.0  ;;  %v447_v50 = vrot.slane %v446_v37, 4  ;;  %v428_v51 = vrot.slane %v427_v3, 2 }
 0x115   : > { %v909_v25 = vpop.eup %908  ;;  %914 = vpow2.f32 %v417_v47  ;;  %v500_v13 = vrot.slane %v499_v15, 4  ;;  %v517_v54 = vadd.f32 %v516_v9, %v515_v10  ;;  %v487_v55 = vmul.f32 %v903_v59, %v1295_v18 }
 0x116   : > { %v453_v14 = vadd.f32 %v909_v25, %v907_v22  ;;  %v376_v57 = vmax.f32 %v374_v43, %v375_v27  ;;  %916 = vpow2.f32 %v419_v26  ;;  %v437_v63 = vrot.slane %v436_v48, 1 }
 0x117   : > { %v511_v1 = vrot.slane %v1388_v46, 2  ;;  %v441_v0 = vadd.f32 %v440_v49, %v439_v33  ;;  %v448_v7 = vadd.f32 %v447_v50, %v446_v37  ;;  %v488_v5 = vmul.f32 %v905_v20, %v1292_v17 }
 0x118   : > { %v454_v52 = vrot.slane %v453_v14, 4  ;;  %v911_v53 = vpop.eup %910  ;;  %v391_v56 = vsub.f32 %v1369_v45, %v376_v57  ;;  %v392_v61 = vsub.f32 %v1367_v44, %v376_v57  ;;  %v429_v12 = vadd.f32 %v428_v51, %v427_v3 }
 0x119   : > { %v913_v62 = vpop.eup %912  ;;  %v489_v19 = vmul.f32 %v907_v22, %v1305_v24  ;;  %v490_v18 = vmul.f32 %v909_v25, %v1302_v23  ;;  %v491_v44 = vmul.f32 %v911_v53, %v1315_v30  ;;  %v1400_v21 = vadd.f32 %v500_v13, %v499_v15 }
 0x11a   : > { %v460_v8 = vadd.f32 %v913_v62, %v911_v53  ;;  %v421_v11 = vmul.f32 1.442695, %v391_v56  ;;  %v423_v40 = vmul.f32 1.442695, %v392_v61  ;;  %v455_v16 = vadd.f32 %v454_v52, %v453_v14 }
 0x11b   : > { %v492_v59 = vmul.f32 %v913_v62, %v1312_v29  ;;  %v442_v58 = vrot.slane %v441_v0, 2  ;;  %v449_v39 = vrot.slane %v448_v7, 2  ;;  %v518_v17 = vrot.slane %v517_v54, 4 }
 0x11c   : > { %v461_v45 = vrot.slane %v460_v8, 4  ;;  %918 = vpow2.f32 %v421_v11  ;;  %v524_v20 = vsel %vm272_vm0, %v487_v55, 0.0  ;;  %v525_v60 = vsel %vm272_vm0, %v488_v5, 0.0 }
 0x11d   : > { %920 = vpow2.f32 %v423_v40  ;;  %v438_v24 = vadd.f32 %v437_v63, %v436_v48  ;;  %v456_v22 = vrot.slane %v455_v16, 2  ;;  %v533_v23 = vsel %vm272_vm0, %v489_v19, 0.0 }
 0x11e   : > { %v462_v2 = vadd.f32 %v461_v45, %v460_v8  ;;  %v534_v30 = vsel %vm272_vm0, %v490_v18, 0.0  ;;  %v430_v29 = vrot.slane %v429_v12, 1  ;;  %v542_v31 = vsel %vm272_vm0, %v491_v44, 0.0 }
 0x11f   : > { %v915_v25 = vpop.eup %914  ;;  %v543_v6 = vsel %vm272_vm0, %v492_v59, 0.0  ;;  %v443_v33 = vadd.f32 %v442_v58, %v441_v0  ;;  %v450_v34 = vadd.f32 %v449_v39, %v448_v7  ;;  %v526_v37 = vadd.f32 %v525_v60, %v524_v20 }
 0x120   : > { %v463_v28 = vrot.slane %v462_v2, 2  ;;  %v917_v32 = vpop.eup %916  ;;  %v493_v4 = vmul.f32 %v915_v25, %v1325_v36  ;;  %v519_v38 = vadd.f32 %v518_v17, %v517_v54  ;;  %v535_v43 = vadd.f32 %v534_v30, %v533_v23 }
 0x121   : > { %v467_v3 = vadd.f32 %v917_v32, %v915_v25  ;;  %v494_v15 = vmul.f32 %v917_v32, %v1322_v35  ;;  %v457_v10 = vadd.f32 %v456_v22, %v455_v16  ;;  %v544_v47 = vadd.f32 %v543_v6, %v542_v31 }
 0x122   : > { %v464_v14 = vadd.f32 %v463_v28, %v462_v2  ;;  %v551_v26 = vsel %vm272_vm0, %v493_v4, 0.0  ;;  %922 = vrcp.f32 %v438_v24  ;;  %v502_v27 = vrot.slane %v1400_v21, 2 }
 0x123   : > { %v468_v48 = vrot.slane %v467_v3, 4  ;;  %v552_v49 = vsel %vm272_vm0, %v494_v15, 0.0  ;;  %v444_v9 = vrot.slane %v443_v33, 1  ;;  %v451_v50 = vrot.slane %v450_v34, 1 }
 0x124   : > { %v527_v57 = vrot.slane %v526_v37, 4  ;;  %v553_v36 = vadd.f32 %v552_v49, %v551_v26  ;;  %v431_v13 = vadd.f32 %v430_v29, %v429_v12  ;;  %v520_v52 = vrot.slane %v519_v38, 2 }
 0x125   : > { %v536_v53 = vrot.slane %v535_v43, 4  ;;  %v469_v35 = vadd.f32 %v468_v48, %v467_v3  ;;  %v458_v55 = vrot.slane %v457_v10, 1  ;;  %v465_v56 = vrot.slane %v464_v14, 1 }
 0x126   : > { %v919_v51 = vpop.eup %918  ;;  %v545_v61 = vrot.slane %v544_v47, 4  ;;  %v554_v5 = vrot.slane %v553_v36, 4  ;;  %v445_v8 = vadd.f32 %v444_v9, %v443_v33  ;;  %v452_v11 = vadd.f32 %v451_v50, %v450_v34 }
 0x127   : > { %v921_v54 = vpop.eup %920  ;;  %v495_v62 = vmul.f32 %v919_v51, %v1335_v42  ;;  %v470_v63 = vrot.slane %v469_v35, 2  ;;  %v528_v40 = vadd.f32 %v527_v57, %v526_v37  ;;  %v537_v12 = vadd.f32 %v536_v53, %v535_v43 }
 0x128   : > { %v474_v0 = vadd.f32 %v921_v54, %v919_v51  ;;  %v496_v7 = vmul.f32 %v921_v54, %v1332_v41  ;;  %924 = vrcp.f32 %v431_v13  ;;  %v459_v44 = vadd.f32 %v458_v55, %v457_v10 }
 0x129   : > { %v560_v16 = vsel %vm272_vm0, %v495_v62, 0.0  ;;  %v471_v19 = vadd.f32 %v470_v63, %v469_v35  ;;  %v546_v58 = vadd.f32 %v545_v61, %v544_v47  ;;  %v466_v42 = vadd.f32 %v465_v56, %v464_v14 }
 0x12a   : > { %v475_v18 = vrot.slane %v474_v0, 4  ;;  %v561_v45 = vsel %vm272_vm0, %v496_v7, 0.0  ;;  %v555_v20 = vadd.f32 %v554_v5, %v553_v36  ;;  %v512_v41 = vadd.f32 %v511_v1, %v1388_v46 }
 0x12b   : > { %v562_v59 = vadd.f32 %v561_v45, %v560_v16  ;;  %v472_v39 = vrot.slane %v471_v19, 1  ;;  %926 = vrcp.f32 %v445_v8  ;;  %v529_v60 = vrot.slane %v528_v40, 2 }
 0x12c   : > { %v476_v17 = vadd.f32 %v475_v18, %v474_v0  ;;  %v923_v24 = vpop.eup %922  ;;  %928 = vrcp.f32 %v452_v11  ;;  %v538_v30 = vrot.slane %v537_v12, 2  ;;  %v503_v25 = vadd.f32 %v502_v27, %v1400_v21 }
 0x12d   : > { %v563_v2 = vrot.slane %v562_v59, 4  ;;  %v473_v22 = vadd.f32 %v472_v39, %v471_v19  ;;  %930 = vrcp.f32 %v459_v44  ;;  %v547_v29 = vrot.slane %v546_v58, 2 }
 0x12e   : > { %v477_v23 = vrot.slane %v476_v17, 2  ;;  %v521_v31 = vadd.f32 %v520_v52, %v519_v38  ;;  %932 = vrcp.f32 %v466_v42  ;;  %v556_v32 = vrot.slane %v555_v20, 2 }
 0x12f   : > { %v564_v28 = vadd.f32 %v563_v2, %v562_v59  ;;  %v530_v33 = vadd.f32 %v529_v60, %v528_v40  ;;  %934 = vrcp.f32 %v473_v22  ;;  %v539_v1 = vadd.f32 %v538_v30, %v537_v12 }
 0x130   : > { %v478_v6 = vadd.f32 %v477_v23, %v476_v17  ;;  %v513_v34 = vrot.slane %v512_v41, 1  ;;  %v504_v37 = vrot.slane %v503_v25, 1  ;;  %v548_v4 = vadd.f32 %v547_v29, %v546_v58  ;;  %v798_v58 = vld [vmem:[%s1478_s3] ss:$0 sm:$0xff] }
 0x131   : > { %v565_v43 = vrot.slane %v564_v28, 2  ;;  %v522_v3 = vrot.slane %v521_v31, 1  ;;  %v557_v10 = vadd.f32 %v556_v32, %v555_v20  ;;  %v531_v21 = vrot.slane %v530_v33, 1 }
 0x132   : > { %v479_v46 = vrot.slane %v478_v6, 1  ;;  %v925_v14 = vpop.eup %924  ;;  %v540_v47 = vrot.slane %v539_v1, 1  ;;  %v514_v38 = vadd.f32 %v513_v34, %v512_v41  ;;  %v505_v27 = vadd.f32 %v504_v37, %v503_v25 }
 0x133   : > { %v549_v48 = vrot.slane %v548_v4, 1  ;;  %v566_v49 = vadd.f32 %v565_v43, %v564_v28  ;;  %v523_v50 = vadd.f32 %v522_v3, %v521_v31  ;;  %v558_v57 = vrot.slane %v557_v10, 1 }
 0x134   : > { %v480_v15 = vadd.f32 %v479_v46, %v478_v6  ;;  %v532_v51 = vadd.f32 %v531_v21, %v530_v33  ;;  %v577_v13 = vmul.f32 %v925_v14, %v505_v27  ;;  %v578_v52 = vmul.f32 %v923_v24, %v514_v38 }
 0x135   : > { %v927_v26 = vpop.eup %926  ;;  %v541_v35 = vadd.f32 %v540_v47, %v539_v1  ;;  %v550_v56 = vadd.f32 %v549_v48, %v548_v4  ;;  %v567_v61 = vrot.slane %v566_v49, 1  ;;  %v559_v63 = vadd.f32 %v558_v57, %v557_v10 }
 0x136   : > { %936 = vrcp.f32 %v480_v15  ;;  %v929_v9 = vpop.eup %928  ;;  %v579_v54 = vmul.f32 %v927_v26, %v523_v50  ;;  %v605_v5 = vsel %vm604_vm2, %v578_v52, %v577_v13 }
 0x137   : > { %v931_v36 = vpop.eup %930  ;;  %v580_v62 = vmul.f32 %v929_v9, %v532_v51  ;;  %v568_v40 = vadd.f32 %v567_v61, %v566_v49 }
 0x138   : > { %v933_v53 = vpop.eup %932  ;;  %v581_v0 = vmul.f32 %v931_v36, %v541_v35  ;;  %v607_v11 = vsel %vm606_vm3, %v579_v54, %v605_v5 }
 0x139   : > { %v935_v55 = vpop.eup %934  ;;  %v582_v7 = vmul.f32 %v933_v53, %v550_v56  ;;  %v609_v16 = vsel %vm608_vm4, %v580_v62, %v607_v11 }
 0x13a   : > { %v583_v8 = vmul.f32 %v935_v55, %v559_v63  ;;  %v611_v19 = vsel %vm610_vm5, %v581_v0, %v609_v16 }
 0x13b   : > { %v613_v45 = vsel %vm612_vm6, %v582_v7, %v611_v19 }
 0x13c   : > { %v615_v44 = vsel %vm614_vm7, %v583_v8, %v613_v45 }
 0x140   : > { %v937_v12 = vpop.eup %936 }
 0x141   : > { %v584_v18 = vmul.f32 %v937_v12, %v568_v40 }
 0x143   : > { %v617_v59 = vsel %vm616_vm8, %v584_v18, %v615_v44 }
 0x144   : > { %820 = vmatmul.mubr.msk.f32.vlgmr.msra.gmra.mrb[0].mxu0 %vm272_vm0, %v617_v59 }
 0x217   : > { %v686_v42 = vpop.f32.mrb[0].mxu0 }
 0x218   : > { %v687_v39 = vadd.f32 %v798_v58, %v686_v42  ;;  %v821_v17 = vpop.f32.mrb[1].mxu0 }
 0x21a   : > { %690 = vst.msk [vmem:[%s231_s29] sm:$0xff] %vm272_vm0, %v687_v39 }
 0x21b   : > { %1009 = shalt.err (!%p1006_p7)
}
 0x21c   : > { %s1010_s11 = scalar_lea.hbm %s1430_s8, 128  ;;  %s1014_s12 = scalar_lea.hbm %s1479_s4, 256 }
 0x21d   : > { %p1011_p9 = scmp.ne.s32.totalorder %s1430_s8, %s1010_s11  ;;  %p1015_p5 = scmp.lt.u32.totalorder %s1430_s8, %s1479_s4 }
 0x21e   : > { %p1016_p11 = scmp.lt.u32.totalorder %s1014_s12, %s1010_s11  ;;  %p1018_p4 = scmp.lt.u32.totalorder %s1010_s11, %s1430_s8 }
 0x21f   : > { %p1012_p1 = pnand %p1011_p9, %p1195_p12 }
 0x220   : > { %p1017_p2 = por %p1016_p11, %p1015_p5 }
 0x221   : > { %p1013_p0 = pneg %p1012_p1 }
 0x222   : > { %p1019_p6 = por %p1018_p4, %p1017_p2 }
 0x224   : > { %p1020_p8 = pnand %p1019_p6, %p1013_p0 }
 0x226   : > { %1023 = shalt.err (!%p1020_p8)
}
 0x227   : > { %834 = dma.vmem_to_hbm [thread:$0]  (%p1195_p12), %s1432_s10, 128, %s1430_s8, %s692_s25  }
 0x228 PF: > { %s717_s9 = sand.u32 1, %s1054_s15   ;;  %p1494_p10 = scmp.ne.s32.totalorder %s1484_s22, 0 }
 0x229   : > { %p1495_p13 = scmp.ge.s32.totalorder %s1066_s18, 2  ;;  %s718_s28 = scalar_lea.sflag [#allocation4], %s717_s9 }
 0x22b   : > { %p845_p3 = pnand %p1495_p13, %p1494_p10 }
 0x22d   : > { %1049 = dma.done.wait (!%p845_p3), %s718_s28, 128  }
 0x22e   : > { %1051 = vsyncadd (!%p845_p3), %s718_s28, 4294967168  ;;  %p18_p7 = scmp.ge.s32.totalorder %s1157_s27, 4   ;;  %s1496_s15 = smov %s1058_s16 }
 0x22f   : > { %s1497_s16 = smov %s1062_s17  ;;  %s1498_s17 = smov %s1191_s24 }
 0x230   : > { %s1499_s18 = smov %s1157_s27  ;;  %20 = sbr.rel (!%p18_p7) target bundleno = 6 (0x6), region = 85 }
 0x237   :  { %723 = vsyncpa [#allocation3], 1 }
 0x238   :  { %725 = vsyncpa [#allocation3 + $0x1], 1 }
 0x239   :  { %726 = vsyncpa [#allocation6], 1 }
 0x23a   :  { %727 = vsyncpa [#allocation4], 1 }
 0x23b   :  { %729 = vsyncpa [#allocation4 + $0x1], 1 }

</bundles_post_ra>
